<compile_context>
chip_gen: v5e
topology: v5e:2x2
jax: 0.10.0
libtpu: 0.0.40
codegen_flags: <defaults>
</compile_context>

<pallas_src>
import jax
import jax.numpy as jnp
from jax.experimental import pallas as pl
from jax.experimental.pallas import tpu as pltpu

_SUBLANES_F32 = 8
_SUBLANES_16B = 16


def _policy_kernel(obs_ref,
                   w_sh_ref, b_sh_ref,
                   w_p1_ref, b_p1_ref,
                   w_p2_ref, b_p2_ref,
                   w_a_ref, b_a_ref,
                   out_ref):
    # MXU operand dtype = stored weight dtype (bf16 production, f32 validation).
    # Accumulation is always f32; bias add / tanh stay f32.
    cdt = w_sh_ref.dtype
    x = obs_ref[...].astype(cdt)

    # shared_net: Linear + Tanh
    h = jnp.tanh(
        jnp.dot(x, w_sh_ref[...], preferred_element_type=jnp.float32) + b_sh_ref[...]
    )
    # policy_net layer 1: Linear + Tanh
    h = jnp.tanh(
        jnp.dot(h.astype(cdt), w_p1_ref[...], preferred_element_type=jnp.float32)
        + b_p1_ref[...]
    )
    # policy_net layer 2: Linear + Tanh
    h = jnp.tanh(
        jnp.dot(h.astype(cdt), w_p2_ref[...], preferred_element_type=jnp.float32)
        + b_p2_ref[...]
    )
    # action_net: plain Linear, stored at its true (narrow) width.
    out = (
        jnp.dot(h.astype(cdt), w_a_ref[...], preferred_element_type=jnp.float32)
        + b_a_ref[...]
    )
    out_ref[...] = out.astype(out_ref.dtype)


def _round_up(x, m):
    return -(-x // m) * m


def export_policy_forward(obs, params, *, batch_tile=2048,
                          compute_dtype=jnp.bfloat16,
                          out_dtype=jnp.bfloat16):
    """obs: (B, obs_dim) float32 (extra dims are flattened). params: see init_params.

    Returns actions of shape (B, action_dim) in `out_dtype` (bf16 by default for
    minimal HBM writeback; pass out_dtype=jnp.float32 if the consumer needs f32).
    """
    obs = obs.reshape(obs.shape[0], -1)        # FlattenExtractor
    B, obs_dim = obs.shape
    H = params["w_sh"].shape[1]
    A = params["w_a"].shape[1]

    # --- tile / grid sizing: no divisibility requirement on B, no wrapper pad ----
    # Round the sublane tile to 16 when the output is 16-bit (bf16 packing), else 8.
    sub = _SUBLANES_16B if jnp.dtype(out_dtype).itemsize < 4 else _SUBLANES_F32
    tile = min(batch_tile, _round_up(pl.cdiv(B, 2), sub))  # >=2 grid steps when possible
    tile = max(tile, sub)
    grid_len = pl.cdiv(B, tile)

    # --- parameter prep: bf16 weights (MXU dtype), f32 biases ---------------------
    w_sh = params["w_sh"].astype(compute_dtype)
    w_p1 = params["w_p1"].astype(compute_dtype)
    w_p2 = params["w_p2"].astype(compute_dtype)
    w_a = params["w_a"].astype(compute_dtype)
    b_sh = params["b_sh"].astype(jnp.float32)
    b_p1 = params["b_p1"].astype(jnp.float32)
    b_p2 = params["b_p2"].astype(jnp.float32)
    b_a = params["b_a"].astype(jnp.float32)

    def bcast(shape):
        # weight / bias blocks: same full block for every grid step
        return pl.BlockSpec(shape, lambda i: (0,) * len(shape))

    param_arrays = (w_sh, b_sh, w_p1, b_p1, w_p2, b_p2, w_a, b_a)
    param_bytes = sum(int(a.size) * a.dtype.itemsize for a in param_arrays)
    cost = pl.CostEstimate(
        flops=2 * B * (obs_dim * H + 2 * H * H + H * A),
        transcendentals=3 * B * H,
        bytes_accessed=B * obs_dim * obs.dtype.itemsize
        + B * A * jnp.dtype(out_dtype).itemsize
        + param_bytes,
    )

    out = pl.pallas_call(
        _policy_kernel,
        out_shape=jax.ShapeDtypeStruct((B, A), out_dtype),
        grid_spec=pltpu.PrefetchScalarGridSpec(
            num_scalar_prefetch=0,
            grid=(grid_len,),
            in_specs=[
                pl.BlockSpec((tile, obs_dim), lambda i: (i, 0)),  # obs tile
                bcast(w_sh.shape), bcast(b_sh.shape),
                bcast(w_p1.shape), bcast(b_p1.shape),
                bcast(w_p2.shape), bcast(b_p2.shape),
                bcast(w_a.shape), bcast(b_a.shape),
            ],
            out_specs=pl.BlockSpec((tile, A), lambda i: (i, 0)),
        ),
        compiler_params=pltpu.CompilerParams(
            dimension_semantics=("parallel",)
        ),
        cost_estimate=cost,
    )(obs, w_sh, b_sh, w_p1, b_p1, w_p2, b_p2, w_a, b_a)

    return out


def init_params(key, obs_dim, hidden, action_dim):
    """Deterministic synthetic init (stands in for the SB3 policy checkpoint)."""
    ks = jax.random.split(key, 8)
    scale = lambda fan_in: 1.0 / jnp.sqrt(jnp.float32(fan_in))
    return {
        "w_sh": jax.random.normal(ks[0], (obs_dim, hidden), jnp.float32) * scale(obs_dim),
        "b_sh": jax.random.normal(ks[1], (1, hidden), jnp.float32) * 0.01,
        "w_p1": jax.random.normal(ks[2], (hidden, hidden), jnp.float32) * scale(hidden),
        "b_p1": jax.random.normal(ks[3], (1, hidden), jnp.float32) * 0.01,
        "w_p2": jax.random.normal(ks[4], (hidden, hidden), jnp.float32) * scale(hidden),
        "b_p2": jax.random.normal(ks[5], (1, hidden), jnp.float32) * 0.01,
        "w_a": jax.random.normal(ks[6], (hidden, action_dim), jnp.float32) * scale(hidden),
        "b_a": jax.random.normal(ks[7], (1, action_dim), jnp.float32) * 0.01,
    }


def reference_forward(obs, p):
    h = jnp.tanh(obs @ p["w_sh"] + p["b_sh"])
    h = jnp.tanh(h @ p["w_p1"] + p["b_p1"])
    h = jnp.tanh(h @ p["w_p2"] + p["b_p2"])
    return h @ p["w_a"] + p["b_a"]


if __name__ == "__main__":
    key = jax.random.PRNGKey(0)
    k_obs, k_params, k_odd, k_big = jax.random.split(key, 4)

    B, OBS_DIM, HIDDEN, ACT_DIM = 8, 16, 32, 4
    obs = jax.random.normal(k_obs, (B, OBS_DIM), jnp.float32)
    params = init_params(k_params, OBS_DIM, HIDDEN, ACT_DIM)
    ref = reference_forward(obs, params)

    # f32 compute + f32 output: strict check against the reference.
    actions_f32 = export_policy_forward(obs, params,
                                        compute_dtype=jnp.float32,
                                        out_dtype=jnp.float32)
    actions_f32 = jax.block_until_ready(actions_f32)
    assert actions_f32.shape == (B, ACT_DIM)
    assert jnp.allclose(actions_f32, ref, atol=1e-5, rtol=1e-5), "f32 mismatch vs reference"

    # Default production path: bf16 MXU operands, bf16 output, looser tolerance.
    actions = export_policy_forward(obs, params)
    actions = jax.block_until_ready(actions)
    assert actions.shape == (B, ACT_DIM)
    assert actions.dtype == jnp.bfloat16
    assert jnp.allclose(actions.astype(jnp.float32), ref,
                        atol=3e-2, rtol=3e-2), "bf16 mismatch vs reference"

    # Batch not divisible by the tile / smaller than a tile: exercises the partial
    # final block (no wrapper-side padding anymore).
    obs_odd = jax.random.normal(k_odd, (6, OBS_DIM), jnp.float32)
    act_odd = jax.block_until_ready(export_policy_forward(obs_odd, params))
    assert act_odd.shape == (6, ACT_DIM)
    assert jnp.allclose(act_odd.astype(jnp.float32), reference_forward(obs_odd, params),
                        atol=3e-2, rtol=3e-2), "partial-block mismatch vs reference"

    # Larger non-aligned batch: multi-step "parallel" grid + partial final block.
    obs_big = jax.random.normal(k_big, (300, OBS_DIM), jnp.float32)
    act_big = jax.block_until_ready(export_policy_forward(obs_big, params))
    assert act_big.shape == (300, ACT_DIM)
    assert jnp.allclose(act_big.astype(jnp.float32), reference_forward(obs_big, params),
                        atol=3e-2, rtol=3e-2), "multi-step grid mismatch vs reference"

    print("KERNEL_OK")
</pallas_src>

<mosaic_0001>
module attributes {stable_mosaic.version = 11 : i64} {
  func.func @_policy_kernel(%arg0: i32, %arg1: memref<8x16xf32, #tpu.memory_space<vmem>>, %arg2: memref<16x32xf32, #tpu.memory_space<vmem>>, %arg3: memref<1x32xf32, #tpu.memory_space<vmem>>, %arg4: memref<32x32xf32, #tpu.memory_space<vmem>>, %arg5: memref<1x32xf32, #tpu.memory_space<vmem>>, %arg6: memref<32x32xf32, #tpu.memory_space<vmem>>, %arg7: memref<1x32xf32, #tpu.memory_space<vmem>>, %arg8: memref<32x4xf32, #tpu.memory_space<vmem>>, %arg9: memref<1x4xf32, #tpu.memory_space<vmem>>, %arg10: memref<8x4xf32, #tpu.memory_space<vmem>>) attributes {dimension_semantics = [#tpu.dimension_semantics<parallel>], iteration_bounds = array<i64: 1>, scalar_prefetch = 0 : i64, scratch_operands = 0 : i64, tpu.core_type = #tpu.core_type<tc>, window_params = [{transform_indices = @transform_0, window_bounds = array<i64: 8, 16>}, {pipeline_mode = #tpu.pipeline_mode<synchronous>, transform_indices = @transform_1, window_bounds = array<i64: 16, 32>}, {pipeline_mode = #tpu.pipeline_mode<synchronous>, transform_indices = @transform_2, window_bounds = array<i64: 1, 32>}, {pipeline_mode = #tpu.pipeline_mode<synchronous>, transform_indices = @transform_3, window_bounds = array<i64: 32, 32>}, {pipeline_mode = #tpu.pipeline_mode<synchronous>, transform_indices = @transform_4, window_bounds = array<i64: 1, 32>}, {pipeline_mode = #tpu.pipeline_mode<synchronous>, transform_indices = @transform_5, window_bounds = array<i64: 32, 32>}, {pipeline_mode = #tpu.pipeline_mode<synchronous>, transform_indices = @transform_6, window_bounds = array<i64: 1, 32>}, {pipeline_mode = #tpu.pipeline_mode<synchronous>, transform_indices = @transform_7, window_bounds = array<i64: 32, 4>}, {pipeline_mode = #tpu.pipeline_mode<synchronous>, transform_indices = @transform_8, window_bounds = array<i64: 1, 4>}, {transform_indices = @transform_9, window_bounds = array<i64: 8, 4>}]} {
    %c0 = arith.constant 0 : index
    %c0_0 = arith.constant 0 : index
    %0 = vector.load %arg1[%c0, %c0_0] : memref<8x16xf32, #tpu.memory_space<vmem>>, vector<8x16xf32>
    %c0_1 = arith.constant 0 : index
    %c0_2 = arith.constant 0 : index
    %1 = vector.load %arg2[%c0_1, %c0_2] : memref<16x32xf32, #tpu.memory_space<vmem>>, vector<16x32xf32>
    %cst = arith.constant dense<0.000000e+00> : vector<8x32xf32>
    %2 = tpu.matmul %0, %1, %cst {dimension_numbers = #tpu.dot_dimension_numbers<[1], [0], [0], [1], [0, 0, 1, 1], [], []>} : vector<8x16xf32>, vector<16x32xf32>, vector<8x32xf32> -> vector<8x32xf32>
    %c0_3 = arith.constant 0 : index
    %c0_4 = arith.constant 0 : index
    %3 = vector.load %arg3[%c0_3, %c0_4] : memref<1x32xf32, #tpu.memory_space<vmem>>, vector<1x32xf32>
    %4 = vector.broadcast %3 : vector<1x32xf32> to vector<8x32xf32>
    %5 = arith.addf %2, %4 : vector<8x32xf32>
    %6 = math.tanh %5 : vector<8x32xf32>
    %c0_5 = arith.constant 0 : index
    %c0_6 = arith.constant 0 : index
    %7 = vector.load %arg4[%c0_5, %c0_6] : memref<32x32xf32, #tpu.memory_space<vmem>>, vector<32x32xf32>
    %cst_7 = arith.constant dense<0.000000e+00> : vector<8x32xf32>
    %8 = tpu.matmul %6, %7, %cst_7 {dimension_numbers = #tpu.dot_dimension_numbers<[1], [0], [0], [1], [0, 0, 1, 1], [], []>} : vector<8x32xf32>, vector<32x32xf32>, vector<8x32xf32> -> vector<8x32xf32>
    %c0_8 = arith.constant 0 : index
    %c0_9 = arith.constant 0 : index
    %9 = vector.load %arg5[%c0_8, %c0_9] : memref<1x32xf32, #tpu.memory_space<vmem>>, vector<1x32xf32>
    %10 = vector.broadcast %9 : vector<1x32xf32> to vector<8x32xf32>
    %11 = arith.addf %8, %10 : vector<8x32xf32>
    %12 = math.tanh %11 : vector<8x32xf32>
    %c0_10 = arith.constant 0 : index
    %c0_11 = arith.constant 0 : index
    %13 = vector.load %arg6[%c0_10, %c0_11] : memref<32x32xf32, #tpu.memory_space<vmem>>, vector<32x32xf32>
    %cst_12 = arith.constant dense<0.000000e+00> : vector<8x32xf32>
    %14 = tpu.matmul %12, %13, %cst_12 {dimension_numbers = #tpu.dot_dimension_numbers<[1], [0], [0], [1], [0, 0, 1, 1], [], []>} : vector<8x32xf32>, vector<32x32xf32>, vector<8x32xf32> -> vector<8x32xf32>
    %c0_13 = arith.constant 0 : index
    %c0_14 = arith.constant 0 : index
    %15 = vector.load %arg7[%c0_13, %c0_14] : memref<1x32xf32, #tpu.memory_space<vmem>>, vector<1x32xf32>
    %16 = vector.broadcast %15 : vector<1x32xf32> to vector<8x32xf32>
    %17 = arith.addf %14, %16 : vector<8x32xf32>
    %18 = math.tanh %17 : vector<8x32xf32>
    %c0_15 = arith.constant 0 : index
    %c0_16 = arith.constant 0 : index
    %19 = vector.load %arg8[%c0_15, %c0_16] : memref<32x4xf32, #tpu.memory_space<vmem>>, vector<32x4xf32>
    %cst_17 = arith.constant dense<0.000000e+00> : vector<8x4xf32>
    %20 = tpu.matmul %18, %19, %cst_17 {dimension_numbers = #tpu.dot_dimension_numbers<[1], [0], [0], [1], [0, 0, 1, 1], [], []>} : vector<8x32xf32>, vector<32x4xf32>, vector<8x4xf32> -> vector<8x4xf32>
    %c0_18 = arith.constant 0 : index
    %c0_19 = arith.constant 0 : index
    %21 = vector.load %arg9[%c0_18, %c0_19] : memref<1x4xf32, #tpu.memory_space<vmem>>, vector<1x4xf32>
    %22 = vector.broadcast %21 : vector<1x4xf32> to vector<8x4xf32>
    %23 = arith.addf %20, %22 : vector<8x4xf32>
    %c0_20 = arith.constant 0 : index
    %c0_21 = arith.constant 0 : index
    %24 = vector.load %arg10[%c0_20, %c0_21] : memref<8x4xf32, #tpu.memory_space<vmem>>, vector<8x4xf32>
    tpu.vector_store %arg10[%c0_20, %c0_21], %23 {strides = array<i32>} : memref<8x4xf32, #tpu.memory_space<vmem>>, vector<8x4xf32>,
    return
  }
  func.func @transform_0(%arg0: i32) -> (i32, i32) {
    %c0_i32 = arith.constant 0 : i32
    %c0_i32_0 = arith.constant 0 : i32
    return %arg0, %c0_i32 : i32, i32
  }
  func.func @transform_1(%arg0: i32) -> (i32, i32) {
    %c0_i32 = arith.constant 0 : i32
    %c0_i32_0 = arith.constant 0 : i32
    %c0_i32_1 = arith.constant 0 : i32
    return %c0_i32, %c0_i32_0 : i32, i32
  }
  func.func @transform_2(%arg0: i32) -> (i32, i32) {
    %c0_i32 = arith.constant 0 : i32
    %c0_i32_0 = arith.constant 0 : i32
    %c0_i32_1 = arith.constant 0 : i32
    return %c0_i32, %c0_i32_0 : i32, i32
  }
  func.func @transform_3(%arg0: i32) -> (i32, i32) {
    %c0_i32 = arith.constant 0 : i32
    %c0_i32_0 = arith.constant 0 : i32
    %c0_i32_1 = arith.constant 0 : i32
    return %c0_i32, %c0_i32_0 : i32, i32
  }
  func.func @transform_4(%arg0: i32) -> (i32, i32) {
    %c0_i32 = arith.constant 0 : i32
    %c0_i32_0 = arith.constant 0 : i32
    %c0_i32_1 = arith.constant 0 : i32
    return %c0_i32, %c0_i32_0 : i32, i32
  }
  func.func @transform_5(%arg0: i32) -> (i32, i32) {
    %c0_i32 = arith.constant 0 : i32
    %c0_i32_0 = arith.constant 0 : i32
    %c0_i32_1 = arith.constant 0 : i32
    return %c0_i32, %c0_i32_0 : i32, i32
  }
  func.func @transform_6(%arg0: i32) -> (i32, i32) {
    %c0_i32 = arith.constant 0 : i32
    %c0_i32_0 = arith.constant 0 : i32
    %c0_i32_1 = arith.constant 0 : i32
    return %c0_i32, %c0_i32_0 : i32, i32
  }
  func.func @transform_7(%arg0: i32) -> (i32, i32) {
    %c0_i32 = arith.constant 0 : i32
    %c0_i32_0 = arith.constant 0 : i32
    %c0_i32_1 = arith.constant 0 : i32
    return %c0_i32, %c0_i32_0 : i32, i32
  }
  func.func @transform_8(%arg0: i32) -> (i32, i32) {
    %c0_i32 = arith.constant 0 : i32
    %c0_i32_0 = arith.constant 0 : i32
    %c0_i32_1 = arith.constant 0 : i32
    return %c0_i32, %c0_i32_0 : i32, i32
  }
  func.func @transform_9(%arg0: i32) -> (i32, i32) {
    %c0_i32 = arith.constant 0 : i32
    %c0_i32_0 = arith.constant 0 : i32
    return %arg0, %c0_i32 : i32, i32
  }
}

</mosaic_0001>

<bundles_post_ra>
// kernel: tpu_custom_call.1
= control target key start
LH: loop header
LB: loop body
LE: loop exit
PB: predicated region body
PF: predicated region fallthrough
CT: control target
= control target key end

     0   :  { %14 = vsyncpa [#allocation3], 0  ;;  %s414_s0 = inlined_call_operand.hbm [shape: f32[8,16], index: 0, kind: input, shape index: {}]   ;;  %s415_s1 = inlined_call_operand.hbm [shape: f32[16,32], index: 1, kind: input, shape index: {}]   ;;  %s416_s2 = inlined_call_operand.vmem [shape: f32[1,32], index: 2, kind: input, shape index: {}]   ;;  %s417_s3 = inlined_call_operand.vmem [shape: f32[32,32], index: 3, kind: input, shape index: {}]   ;;  %s418_s4 = inlined_call_operand.vmem [shape: f32[1,32], index: 4, kind: input, shape index: {}]   ;;  %s419_s5 = inlined_call_operand.hbm [shape: f32[32,32], index: 5, kind: input, shape index: {}]   ;;  %s420_s6 = inlined_call_operand.vmem [shape: f32[1,32], index: 6, kind: input, shape index: {}]   ;;  %s421_s7 = inlined_call_operand.vmem [shape: f32[32,4], index: 7, kind: input, shape index: {}]   ;;  %s422_s8 = inlined_call_operand.vmem [shape: f32[1,4], index: 8, kind: input, shape index: {}]   ;;  %s423_s9 = inlined_call_operand.vmem [shape: f32[8,4], index: 9, kind: output, shape index: {}]  }
   0x1   :  { %15 = vsyncpa [#allocation5], 0  ;;  %s31_s11 = sshll.u32 %s415_s1, 4  ;;  %s308_s12 = smov [#allocation4]   ;;  %s32_s11 = int_to_ptr.hbm [resolvable:$true] %s31_s11 }
   0x2   :  { %s33_s13 = sshll.u32 %s308_s12, 4  ;;  %s21_s16 = sshll.u32 %s414_s0, 4  ;;  %s34_s13 = int_to_ptr.vmem [resolvable:$true] %s33_s13  ;;  %s22_s16 = int_to_ptr.hbm [resolvable:$true] %s21_s16 }
   0x3   :  { %s309_s17 = smov 128   ;;  %s310_s18 = smov 8  }
   0x4   :  { %39 = dma.hbm_to_vmem [thread:$0]  %s32_s11, 256, %s34_s13, [#allocation5], %s309_s17, %s309_s17, %s310_s18  }
   0x5   :  { %s311_s19 = smov [#allocation2]   ;;  %s50_s23 = sshll.u32 %s419_s5, 4  ;;  %s51_s23 = int_to_ptr.hbm [resolvable:$true] %s50_s23 }
   0x6   :  { %s23_s20 = sshll.u32 %s311_s19, 4  ;;  %s312_s1 = smov [#allocation6]   ;;  %s24_s20 = int_to_ptr.vmem [resolvable:$true] %s23_s20 }
   0x7   :  { %26 = dma.hbm_to_vmem [thread:$0]  %s22_s16, 128, %s24_s20, [#allocation3]  }
   0x8   :  { %s52_s24 = sshll.u32 %s312_s1, 4  ;;  %s53_s24 = int_to_ptr.vmem [resolvable:$true] %s52_s24 }
   0x9   :  { %58 = dma.hbm_to_vmem [thread:$0]  %s51_s23, 512, %s53_s24, [#allocation5], %s309_s17, %s309_s17, %s310_s18  }
   0xa   :  { %304 = dma.done.wait [#allocation3], 128  }
   0xb   :  { %305 = vsyncadd [#allocation3], 4294967168 }
   0xc   :  { %306 = dma.done.wait [#allocation5], 768  }
   0xd   :  { %307 = vsyncadd [#allocation5], 4294966528  ;;  %v79_v0 = vld [vmem:[#allocation4 + $0x8] sm:$0xff]  ;;  %v78_v1 = vld [vmem:[#allocation4] sm:$0xff]  ;;  %vm84_vm0 = vcmask 130048   ;;  %vm117_vm1 = vcmask 261120  }
   0xe   :  { %102 = vmatpush.msra.mxu0 %v79_v0  ;;  %v77_v2 = vld [vmem:[#allocation2] sm:$0xff]  ;;  %v112_v3 = vld [vmem:[%s417_s3 + $0x18] sm:$0xff]  ;;  %v111_v4 = vld [vmem:[%s417_s3 + $0x10] sm:$0xff]  ;;  %vm205_vm2 = vcmask 31744  }
   0xf   :  { %133 = vmatpush.msra.mxu1 %v112_v3  ;;  %v110_v5 = vld [vmem:[%s417_s3 + $0x8] sm:$0xff]  ;;  %v109_v6 = vld [vmem:[%s417_s3] sm:$0xff]  ;;  %v145_v11 = vld [vmem:[#allocation6 + $0x18] sm:$0xff] }
  0x10   :  { %103 = vmatpush.msra.mxu0 %v78_v1  ;;  %v222_v7 = vld [vmem:[%s416_s2] ss:$0 sm:$0xff]  ;;  %165 = vmatpush.msra.mxu2 %v145_v11  ;;  %v144_v12 = vld [vmem:[#allocation6 + $0x10] sm:$0xff]  ;;  %v142_v14 = vld [vmem:[#allocation6] sm:$0xff] }
  0x11   :  { %213 = vmatmul.msk.f32.vlgmr.msra.gmra.mxu0 %vm84_vm0, %v77_v2  ;;  %134 = vmatpush.msra.mxu1 %v111_v4  ;;  %v143_v13 = vld [vmem:[#allocation6 + $0x8] sm:$0xff]  ;;  %v177_v19 = vld [vmem:[%s421_s7 + $0x18] sm:$0xff]  ;;  %v176_v20 = vld [vmem:[%s421_s7 + $0x10] sm:$0xff] }
  0x12   :  { %166 = vmatpush.msra.mxu2 %v144_v12  ;;  %v223_v15 = vld [vmem:[%s418_s4] ss:$0 sm:$0xff]  ;;  %197 = vmatpush.msra.mxu3 %v177_v19  ;;  %v175_v21 = vld [vmem:[%s421_s7 + $0x8] sm:$0xff] }
  0x13   :  { %135 = vmatpush.msra.mxu1 %v110_v5  ;;  %v174_v22 = vld [vmem:[%s421_s7] sm:$0xff] }
  0x14   :  { %167 = vmatpush.msra.mxu2 %v143_v13  ;;  %198 = vmatpush.msra.mxu3 %v176_v20  ;;  %v224_v23 = vld [vmem:[%s420_s6] ss:$0 sm:$0xff] }
  0x15   :  { %136 = vmatpush.msra.mxu1 %v109_v6  ;;  %v225_v27 = vld [vmem:[%s422_s8] ss:$0 sm:$0xff] }
  0x16   :  { %168 = vmatpush.msra.mxu2 %v142_v14  ;;  %199 = vmatpush.msra.mxu3 %v175_v21 }
  0x18   :  { %200 = vmatpush.msra.mxu3 %v174_v22 }
  0x8e   :  { %v105_v8 = vpop.f32.mrf.mxu0 }
  0x8f   :  { %v106_v9 = vadd.f32 %v222_v7, %v105_v8 }
  0x91   :  { %226 = vtanh.f32 %v106_v9 }
  0x97   :  { %v227_v10 = vpop.eup %226 }
  0x98   :  { %214 = vmatmul.msk.f32.vlgmr.msra.gmra.mxu1 %vm117_vm1, %v227_v10 }
 0x115   :  { %v138_v16 = vpop.f32.mrf.mxu1 }
 0x116   :  { %v139_v17 = vadd.f32 %v223_v15, %v138_v16 }
 0x118   :  { %228 = vtanh.f32 %v139_v17 }
 0x11e   :  { %v229_v18 = vpop.eup %228 }
 0x11f   :  { %215 = vmatmul.msk.f32.vlgmr.msra.gmra.mxu2 %vm117_vm1, %v229_v18 }
 0x1a2   :  { %v170_v24 = vpop.f32.mrf.mxu2 }
 0x1a3   :  { %v171_v25 = vadd.f32 %v224_v23, %v170_v24 }
 0x1a5   :  { %230 = vtanh.f32 %v171_v25 }
 0x1ab   :  { %v231_v26 = vpop.eup %230 }
 0x1ac   :  { %216 = vmatmul.msk.f32.vlgmr.msra.gmra.mxu3 %vm117_vm1, %v231_v26 }
 0x22f   :  { %v202_v28 = vpop.f32.mrf.mxu3 }
 0x230   :  { %v203_v29 = vadd.f32 %v225_v27, %v202_v28 }
 0x232   :  { %206 = vst.msk [vmem:[%s423_s9] sm:$0xff] %vm205_vm2, %v203_v29 }
 0x233   :  { %211 = vsyncpa [#allocation3], 1 }
 0x234   :  { %212 = vsyncpa [#allocation5], 1 }

</bundles_post_ra>
